<compile_context>
chip_gen: v5e
topology: v5e:2x2
jax: 0.10.0
libtpu: 0.0.40
codegen_flags: <defaults>
</compile_context>

<pallas_src>
import functools

import jax
import jax.numpy as jnp
from jax.experimental import pallas as pl
from jax.experimental.pallas import tpu as pltpu


# ----------------------------------------------------------------------------
# Helpers
# ----------------------------------------------------------------------------
def _round_up(x, m):
    return ((x + m - 1) // m) * m


def _choose_k_tile(kp):
    # kp is a multiple of 128.  Cap the K tile at 768 so large-K layers get
    # >= 2 reduction steps (gives the BlockSpec double buffer DMAs to hide).
    if kp <= 768:
        return kp
    for cand in (768, 512, 384, 256, 128):
        if kp % cand == 0:
            return cand
    return 128


def _vmem_limit(step_bytes):
    # Generous multiple of the per-step footprint, capped at 48 MiB so the
    # same setting is safe on a 64 MiB v7x TensorCore.
    return int(min(max(2 * step_bytes, 16 << 20), 48 << 20))


# ----------------------------------------------------------------------------
# Fused tiled matmul: out = [ReLU]( A @ B + bias [+ residual] )
# A: (M, K) bf16, B: (K, N) bf16, bias: (1, N) f32, residual: (M, N) bf16
# ----------------------------------------------------------------------------
def _matmul_kernel(a_ref, b_ref, bias_ref, *rest, relu, has_res):
    if has_res:
        res_ref, o_ref, acc_ref = rest
    else:
        o_ref, acc_ref = rest
        res_ref = None

    k = pl.program_id(2)

    @pl.when(k == 0)
    def _():
        acc_ref[...] = jnp.zeros_like(acc_ref)

    acc_ref[...] += jnp.dot(a_ref[...], b_ref[...],
                            preferred_element_type=jnp.float32)

    @pl.when(k == pl.num_programs(2) - 1)
    def _():
        y = acc_ref[...] + bias_ref[...]
        if res_ref is not None:
            y = y + res_ref[...].astype(jnp.float32)
        if relu:
            y = jnp.maximum(y, 0.0)
        o_ref[...] = y.astype(o_ref.dtype)


@functools.partial(jax.jit, static_argnames=("relu", "out_dtype"))
def fused_matmul(a, b, bias, residual=None, *, relu=False,
                 out_dtype=jnp.bfloat16):
    M, K = a.shape
    _, N = b.shape
    a = a.astype(jnp.bfloat16)
    b = b.astype(jnp.bfloat16)
    bias = bias.astype(jnp.float32).reshape(1, N)

    # Tile sizes: lane-dense N tiles (multiple of 128, up to 512), M rounded to
    # 16 (bf16 sublane packing) up to 512, K padded to 128 and swept by the
    # "arbitrary" grid axis (tile capped at 768 -> >=2 steps for big K).
    tm = min(512, _round_up(M, 16))
    tn = min(512, _round_up(N, 128))
    Mp = _round_up(M, tm)
    Np = _round_up(N, tn)
    Kp = _round_up(K, 128)
    tk = _choose_k_tile(Kp)
    Kp = _round_up(Kp, tk)

    if (Mp, Kp) != (M, K):
        a = jnp.pad(a, ((0, Mp - M), (0, Kp - K)))
    if (Kp, Np) != (K, N):
        b = jnp.pad(b, ((0, Kp - K), (0, Np - N)))
    if Np != N:
        bias = jnp.pad(bias, ((0, 0), (0, Np - N)))

    has_res = residual is not None
    in_specs = [
        pl.BlockSpec((tm, tk), lambda i, j, k: (i, k)),
        pl.BlockSpec((tk, tn), lambda i, j, k: (k, j)),
        pl.BlockSpec((1, tn), lambda i, j, k: (0, j)),
    ]
    args = [a, b, bias]
    if has_res:
        r = residual.astype(jnp.bfloat16)
        if (Mp, Np) != (M, N):
            r = jnp.pad(r, ((0, Mp - M), (0, Np - N)))
        in_specs.append(pl.BlockSpec((tm, tn), lambda i, j, k: (i, j)))
        args.append(r)

    out_bytes = jnp.dtype(out_dtype).itemsize
    step_bytes = 2 * (tm * tk * 2 + tk * tn * 2 + tn * 4
                      + (tm * tn * 2 if has_res else 0))
    step_bytes += 2 * tm * tn * out_bytes + tm * tn * 4
    vmem_limit = _vmem_limit(2 * step_bytes)

    grid = (Mp // tm, Np // tn, Kp // tk)
    out = pl.pallas_call(
        functools.partial(_matmul_kernel, relu=relu, has_res=has_res),
        out_shape=jax.ShapeDtypeStruct((Mp, Np), out_dtype),
        grid=grid,
        in_specs=in_specs,
        out_specs=pl.BlockSpec((tm, tn), lambda i, j, k: (i, j)),
        scratch_shapes=[pltpu.VMEM((tm, tn), jnp.float32)],
        compiler_params=pltpu.CompilerParams(
            dimension_semantics=("parallel", "parallel", "arbitrary"),
            vmem_limit_bytes=vmem_limit,
        ),
    )(*args)

    if (Mp, Np) != (M, N):
        out = out[:M, :N]
    return out


# ----------------------------------------------------------------------------
# Direct 3x3 / stride-1 / pad-1 conv + folded-BN bias [+ ReLU], no HBM im2col.
#
# The padded image is presented flattened as (Hp*Wp, Cin).  For kernel tap
# (di, dj) the patch column block is a *contiguous* span of Ho*Wp rows starting
# at di*Wp + dj; rows whose column index falls in the horizontal padding are
# junk and are dropped by slicing the (N, Ho, Wp, Cout) output back to Wo.
# ----------------------------------------------------------------------------
def _conv3x3_kernel(x_ref, w_ref, bias_ref, o_ref, *, wp, k_extra, relu):
    m = o_ref.shape[1]                                     # Ho * Wp
    taps = [x_ref[0, pl.ds(di * wp + dj, m), :]
            for di in range(3) for dj in range(3)]
    if k_extra:
        taps.append(jnp.zeros((m, k_extra), jnp.bfloat16))
    a = jnp.concatenate(taps, axis=-1)                     # (m, Kp) bf16 in VMEM
    y = jnp.dot(a, w_ref[...], preferred_element_type=jnp.float32)
    y = y + bias_ref[...]
    if relu:
        y = jnp.maximum(y, 0.0)
    o_ref[0] = y.astype(o_ref.dtype)


@functools.partial(jax.jit, static_argnames=("relu",))
def conv3x3_s1_bn(x, w, bias, *, relu=True):
    n, h, wd, cin = x.shape
    kdim, cout = w.shape                                   # kdim == 9 * cin
    x = x.astype(jnp.bfloat16)
    w = w.astype(jnp.bfloat16)
    bias = bias.astype(jnp.float32).reshape(1, cout)

    # Pad the matmul K / N dims to multiples of 128 (only layer1's cin/cout=64
    # actually needs this; the pad is a few KiB).
    kp = _round_up(kdim, 128)
    npad = _round_up(cout, 128)
    if kp != kdim:
        w = jnp.pad(w, ((0, kp - kdim), (0, 0)))
    if npad != cout:
        w = jnp.pad(w, ((0, 0), (0, npad - cout)))
        bias = jnp.pad(bias, ((0, 0), (0, npad - cout)))

    # Zero-pad H by (1, 2) and W by (1, 1): the extra bottom row keeps the
    # shifted span read of the (2, 2) tap inside the flattened buffer.
    xp = jnp.pad(x, ((0, 0), (1, 2), (1, 1), (0, 0)))
    wp = wd + 2
    lp = (h + 3) * wp
    xf = xp.reshape(n, lp, cin)                            # free reshape
    mspan = h * wp

    step_bytes = (2 * (lp * cin * 2 + kp * npad * 2 + npad * 4
                       + mspan * npad * 2)
                  + mspan * kp * 2 + mspan * npad * 4)
    vmem_limit = _vmem_limit(step_bytes)

    out = pl.pallas_call(
        functools.partial(_conv3x3_kernel, wp=wp, k_extra=kp - kdim, relu=relu),
        out_shape=jax.ShapeDtypeStruct((n, mspan, npad), jnp.bfloat16),
        grid=(n,),
        in_specs=[
            pl.BlockSpec((1, lp, cin), lambda b: (b, 0, 0)),
            pl.BlockSpec((kp, npad), lambda b: (0, 0)),
            pl.BlockSpec((1, npad), lambda b: (0, 0)),
        ],
        out_specs=pl.BlockSpec((1, mspan, npad), lambda b: (b, 0, 0)),
        compiler_params=pltpu.CompilerParams(
            dimension_semantics=("parallel",),
            vmem_limit_bytes=vmem_limit,
        ),
    )(xf, w, bias)
    # Drop the junk (horizontal-pad) columns and the channel padding.
    return out.reshape(n, h, wp, npad)[:, :, :wd, :cout]


# ----------------------------------------------------------------------------
# 3x3 / stride-2 max pool (bf16, dense 3x3 max in-kernel, stride-2 select in XLA).
# TODO(synk): the stride-2 selection could be folded into the kernel via
# strided pl.ds reads to save one small HBM pass; kept outside for robustness.
# ----------------------------------------------------------------------------
def _maxpool3x3_kernel(x_ref, o_ref):
    hp = x_ref.shape[1]
    x = x_ref[0]                                            # (Hp, Wp, C) bf16
    wp = x.shape[1]
    m = jnp.maximum(jnp.maximum(x[:, 0:wp - 2, :], x[:, 1:wp - 1, :]),
                    x[:, 2:wp, :])
    m = jnp.maximum(jnp.maximum(m[0:hp - 2], m[1:hp - 1]), m[2:hp])
    o_ref[0] = m.astype(o_ref.dtype)


@jax.jit
def maxpool3x3_s2(x):                          # NHWC, kernel 3, stride 2, pad 1
    n, h, w, c = x.shape
    xp = jnp.pad(x, ((0, 0), (1, 1), (1, 1), (0, 0)),
                 constant_values=-jnp.inf)
    hp, wp = h + 2, w + 2
    fm = pl.pallas_call(
        _maxpool3x3_kernel,
        out_shape=jax.ShapeDtypeStruct((n, hp - 2, wp - 2, c), x.dtype),
        grid=(n,),
        in_specs=[pl.BlockSpec((1, hp, wp, c), lambda b: (b, 0, 0, 0))],
        out_specs=pl.BlockSpec((1, hp - 2, wp - 2, c), lambda b: (b, 0, 0, 0)),
        compiler_params=pltpu.CompilerParams(
            dimension_semantics=("parallel",)),
    )(xp)
    ho = (h - 1) // 2 + 1
    wo = (w - 1) // 2 + 1
    return fm[:, : 2 * ho - 1 : 2, : 2 * wo - 1 : 2, :]


# ----------------------------------------------------------------------------
# Global average pool: (N, HW, C) -> (N, C), tiled over channels.
# ----------------------------------------------------------------------------
def _gap_kernel(x_ref, o_ref):
    o_ref[...] = jnp.mean(x_ref[...].astype(jnp.float32), axis=1)


@jax.jit
def global_avg_pool(x):                        # (N, HW, C) -> (N, C) float32
    n, hw, c = x.shape
    tc = 512 if c % 512 == 0 else (128 if c % 128 == 0 else c)
    return pl.pallas_call(
        _gap_kernel,
        out_shape=jax.ShapeDtypeStruct((n, c), jnp.float32),
        grid=(c // tc,),
        in_specs=[pl.BlockSpec((n, hw, tc), lambda j: (0, 0, j))],
        out_specs=pl.BlockSpec((n, tc), lambda j: (0, j)),
        compiler_params=pltpu.CompilerParams(
            dimension_semantics=("parallel",)),
    )(x)


# ----------------------------------------------------------------------------
# JAX glue: im2col fallback / conv / bottleneck / forward graph
# ----------------------------------------------------------------------------
def im2col(x, kh, kw, stride, pad):
    # Only used for the 7x7/s2 stem and the three 3x3/s2 convs.
    # TODO(synk): those strided convs could also avoid im2col with stride-2
    # span reads; kept on the matmul fallback since they are a small fraction.
    n, h, w, c = x.shape
    if pad > 0:
        x = jnp.pad(x, ((0, 0), (pad, pad), (pad, pad), (0, 0)))
    ho = (h + 2 * pad - kh) // stride + 1
    wo = (w + 2 * pad - kw) // stride + 1
    cols = []
    for i in range(kh):
        for j in range(kw):
            cols.append(x[:, i:i + (ho - 1) * stride + 1:stride,
                             j:j + (wo - 1) * stride + 1:stride, :])
    patches = jnp.stack(cols, axis=3)          # (n, ho, wo, kh*kw, c)
    return patches.reshape(n * ho * wo, kh * kw * c), ho, wo


def conv_bn(x, p, kh, kw, stride, pad, relu, residual=None):
    n = x.shape[0]
    if kh == 1 and kw == 1:
        if stride > 1:
            # TODO(synk): fold the stride into the matmul A index_map instead
            # of this XLA strided slice (one extra activation pass).
            x = x[:, ::stride, ::stride, :]
        _, ho, wo, cin = x.shape
        patches = x.reshape(n * ho * wo, cin)
        cout = p["w"].shape[1]
        res2d = None
        if residual is not None:
            res2d = residual.reshape(n * ho * wo, cout)
        y = fused_matmul(patches, p["w"], p["bias"], res2d, relu=relu)
        return y.reshape(n, ho, wo, cout)

    if kh == 3 and kw == 3 and stride == 1 and residual is None:
        return conv3x3_s1_bn(x, p["w"], p["bias"], relu=relu)

    # Fallback: im2col + fused matmul (conv1 7x7/s2, 3x3/s2 convs).
    patches, ho, wo = im2col(x, kh, kw, stride, pad)
    cout = p["w"].shape[1]
    res2d = None
    if residual is not None:
        res2d = residual.reshape(n * ho * wo, cout)
    y = fused_matmul(patches, p["w"], p["bias"], res2d, relu=relu)
    return y.reshape(n, ho, wo, cout)


def bottleneck(x, p, stride):
    out = conv_bn(x, p["c1"], 1, 1, 1, 0, relu=True)
    out = conv_bn(out, p["c2"], 3, 3, stride, 1, relu=True)
    if "ds" in p:
        identity = conv_bn(x, p["ds"], 1, 1, stride, 0, relu=False)
    else:
        identity = x
    # Residual add + ReLU fused into the c3 matmul epilogue.
    return conv_bn(out, p["c3"], 1, 1, 1, 0, relu=True, residual=identity)


def resnet50_forward(params, x_nchw):
    x = jnp.transpose(x_nchw, (0, 2, 3, 1)).astype(jnp.bfloat16)   # NCHW -> NHWC
    x = conv_bn(x, params["conv1"], 7, 7, 2, 3, relu=True)
    x = maxpool3x3_s2(x)
    strides = [1, 2, 2, 2]
    for li, layer in enumerate(params["layers"]):
        for bi, bp in enumerate(layer):
            x = bottleneck(x, bp, strides[li] if bi == 0 else 1)
    n, h, w, c = x.shape
    pooled = global_avg_pool(x.reshape(n, h * w, c))               # (N, 2048) f32
    logits = fused_matmul(pooled.astype(jnp.bfloat16), params["fc_w"],
                          params["fc_b"], relu=False, out_dtype=jnp.float32)
    return logits                                                  # (N, 10)


# ----------------------------------------------------------------------------
# Deterministic parameter construction (shapes follow torchvision resnet50)
# ----------------------------------------------------------------------------
def conv_bn_params(key, kh, kw, cin, cout):
    k1, k2, k3, k4, k5 = jax.random.split(key, 5)
    fan_in = kh * kw * cin
    w = jax.random.normal(k1, (kh, kw, cin, cout), jnp.float32) * jnp.sqrt(2.0 / fan_in)
    gamma = 1.0 + 0.1 * jax.random.normal(k2, (cout,), jnp.float32)
    beta = 0.1 * jax.random.normal(k3, (cout,), jnp.float32)
    mean = 0.1 * jax.random.normal(k4, (cout,), jnp.float32)
    var = jax.random.uniform(k5, (cout,), jnp.float32, minval=0.5, maxval=1.5)
    scale = gamma / jnp.sqrt(var + 1e-5)
    bias = beta - mean * scale
    # Fold the BN scale into the weight columns; kernel epilogue is bias-only.
    w_folded = (w.reshape(fan_in, cout) * scale[None, :]).astype(jnp.bfloat16)
    return {"w": w_folded, "bias": bias.reshape(1, cout)}


def bottleneck_params(key, cin, planes, downsample):
    ks = jax.random.split(key, 4)
    p = {
        "c1": conv_bn_params(ks[0], 1, 1, cin, planes),
        "c2": conv_bn_params(ks[1], 3, 3, planes, planes),
        "c3": conv_bn_params(ks[2], 1, 1, planes, planes * 4),
    }
    if downsample:
        p["ds"] = conv_bn_params(ks[3], 1, 1, cin, planes * 4)
    return p


def init_params(key):
    keys = jax.random.split(key, 7)
    params = {"conv1": conv_bn_params(keys[0], 7, 7, 3, 64)}
    blocks = [3, 4, 6, 3]
    planes = [64, 128, 256, 512]
    inplanes = 64
    layers = []
    for i in range(4):
        lk = jax.random.split(keys[1 + i], blocks[i])
        layer = []
        for b in range(blocks[i]):
            cin = inplanes if b == 0 else planes[i] * 4
            layer.append(bottleneck_params(lk[b], cin, planes[i], downsample=(b == 0)))
        inplanes = planes[i] * 4
        layers.append(layer)
    params["layers"] = layers
    params["fc_w"] = (jax.random.normal(keys[5], (2048, 10), jnp.float32) * 0.02
                      ).astype(jnp.bfloat16)
    params["fc_b"] = jax.random.normal(keys[6], (10,), jnp.float32) * 0.02
    return params


if __name__ == "__main__":
    key = jax.random.PRNGKey(0)
    pkey, xkey = jax.random.split(key)
    params = init_params(pkey)
    # Small NCHW input consistent with the module (3-channel image).
    x = jax.random.normal(xkey, (2, 3, 32, 32), jnp.float32)
    forward = jax.jit(resnet50_forward)
    logits = forward(params, x)
    logits = jax.block_until_ready(logits)
    assert logits.shape == (2, 10), logits.shape
    assert bool(jnp.all(jnp.isfinite(logits)))
    print("KERNEL_OK")
</pallas_src>

<mosaic_0001>
module attributes {stable_mosaic.version = 11 : i64} {
  func.func @_matmul_kernel(%arg0: i32, %arg1: i32, %arg2: i32, %arg3: memref<512x256xbf16, #tpu.memory_space<vmem>>, %arg4: memref<256x128xbf16, #tpu.memory_space<vmem>>, %arg5: memref<1x128xf32, #tpu.memory_space<vmem>>, %arg6: memref<512x128xbf16, #tpu.memory_space<vmem>>, %arg7: memref<512x128xf32, #tpu.memory_space<vmem>>) attributes {dimension_semantics = [#tpu.dimension_semantics<parallel>, #tpu.dimension_semantics<parallel>, #tpu.dimension_semantics<arbitrary>], iteration_bounds = array<i64: 1, 1, 1>, scalar_prefetch = 0 : i64, scratch_operands = 1 : i64, tpu.core_type = #tpu.core_type<tc>, window_params = [{transform_indices = @transform_0, window_bounds = array<i64: 512, 256>}, {transform_indices = @transform_1, window_bounds = array<i64: 256, 128>}, {transform_indices = @transform_2, window_bounds = array<i64: 1, 128>}, {transform_indices = @transform_3, window_bounds = array<i64: 512, 128>}]} {
    %c0_i32 = arith.constant 0 : i32
    %0 = arith.cmpi eq, %arg2, %c0_i32 : i32
    %1 = arith.extui %0 : i1 to i32
    %c0_i32_0 = arith.constant 0 : i32
    %2 = arith.cmpi ne, %1, %c0_i32_0 : i32
    scf.if %2 {
      %cst_10 = arith.constant 0.000000e+00 : f32
      %12 = vector.broadcast %cst_10 : f32 to vector<512x128xf32>
      %c0_11 = arith.constant 0 : index
      %c0_12 = arith.constant 0 : index
      %13 = vector.load %arg7[%c0_11, %c0_12] : memref<512x128xf32, #tpu.memory_space<vmem>>, vector<512x128xf32>
      tpu.vector_store %arg7[%c0_11, %c0_12], %12 {strides = array<i32>} : memref<512x128xf32, #tpu.memory_space<vmem>>, vector<512x128xf32>,
    } else {
    }
    %c0 = arith.constant 0 : index
    %c0_1 = arith.constant 0 : index
    %3 = vector.load %arg7[%c0, %c0_1] : memref<512x128xf32, #tpu.memory_space<vmem>>, vector<512x128xf32>
    %c0_2 = arith.constant 0 : index
    %c0_3 = arith.constant 0 : index
    %4 = vector.load %arg3[%c0_2, %c0_3] : memref<512x256xbf16, #tpu.memory_space<vmem>>, vector<512x256xbf16>
    %c0_4 = arith.constant 0 : index
    %c0_5 = arith.constant 0 : index
    %5 = vector.load %arg4[%c0_4, %c0_5] : memref<256x128xbf16, #tpu.memory_space<vmem>>, vector<256x128xbf16>
    %cst = arith.constant dense<0.000000e+00> : vector<512x128xf32>
    %6 = tpu.matmul %4, %5, %cst {dimension_numbers = #tpu.dot_dimension_numbers<[1], [0], [0], [1], [0, 0, 1, 1], [], []>} : vector<512x256xbf16>, vector<256x128xbf16>, vector<512x128xf32> -> vector<512x128xf32>
    %7 = arith.addf %3, %6 : vector<512x128xf32>
    %c0_6 = arith.constant 0 : index
    %c0_7 = arith.constant 0 : index
    %8 = vector.load %arg7[%c0_6, %c0_7] : memref<512x128xf32, #tpu.memory_space<vmem>>, vector<512x128xf32>
    tpu.vector_store %arg7[%c0_6, %c0_7], %7 {strides = array<i32>} : memref<512x128xf32, #tpu.memory_space<vmem>>, vector<512x128xf32>,
    %c0_i32_8 = arith.constant 0 : i32
    %9 = arith.cmpi eq, %arg2, %c0_i32_8 : i32
    %10 = arith.extui %9 : i1 to i32
    %c0_i32_9 = arith.constant 0 : i32
    %11 = arith.cmpi ne, %10, %c0_i32_9 : i32
    scf.if %11 {
      %c0_10 = arith.constant 0 : index
      %c0_11 = arith.constant 0 : index
      %12 = vector.load %arg7[%c0_10, %c0_11] : memref<512x128xf32, #tpu.memory_space<vmem>>, vector<512x128xf32>
      %c0_12 = arith.constant 0 : index
      %c0_13 = arith.constant 0 : index
      %13 = vector.load %arg5[%c0_12, %c0_13] : memref<1x128xf32, #tpu.memory_space<vmem>>, vector<1x128xf32>
      %14 = vector.broadcast %13 : vector<1x128xf32> to vector<512x128xf32>
      %15 = arith.addf %12, %14 : vector<512x128xf32>
      %cst_14 = arith.constant 0.000000e+00 : f32
      %16 = vector.broadcast %cst_14 : f32 to vector<512x128xf32>
      %17 = arith.maximumf %15, %16 : vector<512x128xf32>
      %18 = arith.truncf %17 : vector<512x128xf32> to vector<512x128xbf16>
      %c0_15 = arith.constant 0 : index
      %c0_16 = arith.constant 0 : index
      %19 = vector.load %arg6[%c0_15, %c0_16] : memref<512x128xbf16, #tpu.memory_space<vmem>>, vector<512x128xbf16>
      tpu.vector_store %arg6[%c0_15, %c0_16], %18 {strides = array<i32>} : memref<512x128xbf16, #tpu.memory_space<vmem>>, vector<512x128xbf16>,
    } else {
    }
    return
  }
  func.func @transform_0(%arg0: i32, %arg1: i32, %arg2: i32) -> (i32, i32) {
    %c0_i32 = arith.constant 0 : i32
    return %arg0, %arg2 : i32, i32
  }
  func.func @transform_1(%arg0: i32, %arg1: i32, %arg2: i32) -> (i32, i32) {
    %c0_i32 = arith.constant 0 : i32
    return %arg2, %arg1 : i32, i32
  }
  func.func @transform_2(%arg0: i32, %arg1: i32, %arg2: i32) -> (i32, i32) {
    %c0_i32 = arith.constant 0 : i32
    %c0_i32_0 = arith.constant 0 : i32
    return %c0_i32, %arg1 : i32, i32
  }
  func.func @transform_3(%arg0: i32, %arg1: i32, %arg2: i32) -> (i32, i32) {
    %c0_i32 = arith.constant 0 : i32
    return %arg0, %arg1 : i32, i32
  }
}

</mosaic_0001>

<bundles_post_ra>
// kernel: fused_matmul.1
= control target key start
LH: loop header
LB: loop body
LE: loop exit
PB: predicated region body
PF: predicated region fallthrough
CT: control target
= control target key end

     0   :  { %s2680_s1 = inlined_call_operand.vmem [shape: bf16[256,128], index: 1, kind: input, shape index: {}]   ;;  %s2681_s0 = inlined_call_operand.vmem [shape: bf16[512,256], index: 0, kind: input, shape index: {}]   ;;  %s2682_s2 = inlined_call_operand.vmem [shape: f32[1,128], index: 2, kind: input, shape index: {}]   ;;  %s2683_s3 = inlined_call_operand.vmem [shape: bf16[512,128], index: 3, kind: output, shape index: {}]  }
   0x1   :  { %v1846_v0 = vld [vmem:[%s2680_s1 + $0x38] sm:$0xff]  ;;  %v1845_v2 = vld [vmem:[%s2680_s1 + $0x30] sm:$0xff]  ;;  %v1844_v4 = vld [vmem:[%s2680_s1 + $0x28] sm:$0xff] }
   0x2   :  { %v1854_v1 = vld [vmem:[%s2680_s1 + $0x78] sm:$0xff]  ;;  %658 = vmatpush.bf16.msra.mxu0 %v1846_v0  ;;  %2046 = vmatpush.bf16.msra.mxu2 %v1846_v0  ;;  %v1853_v3 = vld [vmem:[%s2680_s1 + $0x70] sm:$0xff]  ;;  %v1852_v5 = vld [vmem:[%s2680_s1 + $0x68] sm:$0xff] }
   0x3   :  { %827 = vmatpush.bf16.msra.mxu1 %v1854_v1  ;;  %2054 = vmatpush.bf16.msra.mxu3 %v1854_v1  ;;  %v1843_v6 = vld [vmem:[%s2680_s1 + $0x20] sm:$0xff]  ;;  %v1842_v8 = vld [vmem:[%s2680_s1 + $0x18] sm:$0xff]  ;;  %v1841_v10 = vld [vmem:[%s2680_s1 + $0x10] sm:$0xff] }
   0x4   :  { %v1851_v7 = vld [vmem:[%s2680_s1 + $0x60] sm:$0xff]  ;;  %v1850_v9 = vld [vmem:[%s2680_s1 + $0x58] sm:$0xff]  ;;  %v1849_v11 = vld [vmem:[%s2680_s1 + $0x50] sm:$0xff] }
   0x5   :  { %v1840_v12 = vld [vmem:[%s2680_s1 + $0x8] sm:$0xff]  ;;  %v1839_v14 = vld [vmem:[%s2680_s1] sm:$0xff]  ;;  %v1465_v28 = vld [vmem:[%s2681_s0 + $0x10] sm:$0xf] }
   0x6   :  { %659 = vmatpush.bf16.msra.mxu0 %v1845_v2  ;;  %2047 = vmatpush.bf16.msra.mxu2 %v1845_v2  ;;  %v1848_v13 = vld [vmem:[%s2680_s1 + $0x48] sm:$0xff]  ;;  %v1847_v15 = vld [vmem:[%s2680_s1 + $0x40] sm:$0xff]  ;;  %v1778_v29 = vld [vmem:[%s2681_s0 + $0x14] sm:$0xf0] }
   0x7   :  { %828 = vmatpush.bf16.msra.mxu1 %v1853_v3  ;;  %2055 = vmatpush.bf16.msra.mxu3 %v1853_v3  ;;  %v1457_v16 = vld [vmem:[%s2681_s0] sm:$0xf]  ;;  %v1776_v17 = vld [vmem:[%s2681_s0 + $0x4] sm:$0xf0]  ;;  %v1775_v20 = vld [vmem:[%s2681_s0 + $0x4] sm:$0xf]  ;;  %v1466_v36 = vor.u32 %v1778_v29, %v1465_v28 }
   0x8   :  { %v1585_v18 = vld [vmem:[%s2681_s0 + $0x100] sm:$0xf]  ;;  %v1808_v19 = vld [vmem:[%s2681_s0 + $0x104] sm:$0xf0]  ;;  %v1459_v21 = vld [vmem:[%s2681_s0 + $0x8] sm:$0xf0]  ;;  %v1458_v24 = vor.u32 %v1776_v17, %v1457_v16 }
   0x9   :  { %v1807_v22 = vld [vmem:[%s2681_s0 + $0x104] sm:$0xf]  ;;  %v1587_v23 = vld [vmem:[%s2681_s0 + $0x108] sm:$0xf0]  ;;  %v1586_v25 = vor.u32 %v1808_v19, %v1585_v18  ;;  %v1462_v26 = vor.u32 %v1775_v20, %v1459_v21  ;;  %v1593_v30 = vld [vmem:[%s2681_s0 + $0x110] sm:$0xf] }
   0xa   :  { %660 = vmatpush.bf16.msra.mxu0 %v1844_v4  ;;  %2048 = vmatpush.bf16.msra.mxu2 %v1844_v4  ;;  %v1590_v27 = vor.u32 %v1807_v22, %v1587_v23  ;;  %v1810_v31 = vld [vmem:[%s2681_s0 + $0x114] sm:$0xf0]  ;;  %v1777_v32 = vld [vmem:[%s2681_s0 + $0x14] sm:$0xf]  ;;  %v1467_v33 = vld [vmem:[%s2681_s0 + $0x18] sm:$0xf0] }
   0xb   :  { %829 = vmatpush.bf16.msra.mxu1 %v1852_v5  ;;  %2056 = vmatpush.bf16.msra.mxu3 %v1852_v5  ;;  %v1809_v34 = vld [vmem:[%s2681_s0 + $0x114] sm:$0xf]  ;;  %v1595_v35 = vld [vmem:[%s2681_s0 + $0x118] sm:$0xf0]  ;;  %v1594_v37 = vor.u32 %v1810_v31, %v1593_v30  ;;  %v1470_v38 = vor.u32 %v1777_v32, %v1467_v33  ;;  %v1473_v40 = vld [vmem:[%s2681_s0 + $0x20] sm:$0xf] }
   0xc   :  { %v1598_v39 = vor.u32 %v1809_v34, %v1595_v35  ;;  %v1780_v41 = vld [vmem:[%s2681_s0 + $0x24] sm:$0xf0]  ;;  %v1601_v42 = vld [vmem:[%s2681_s0 + $0x120] sm:$0xf]  ;;  %v1779_v44 = vld [vmem:[%s2681_s0 + $0x24] sm:$0xf] }
   0xd   :  { %v1812_v43 = vld [vmem:[%s2681_s0 + $0x124] sm:$0xf0]  ;;  %v1475_v45 = vld [vmem:[%s2681_s0 + $0x28] sm:$0xf0]  ;;  %v1811_v46 = vld [vmem:[%s2681_s0 + $0x124] sm:$0xf]  ;;  %v1474_v48 = vor.u32 %v1780_v41, %v1473_v40 }
   0xe   :  { %661 = vmatpush.bf16.msra.mxu0 %v1843_v6  ;;  %2049 = vmatpush.bf16.msra.mxu2 %v1843_v6  ;;  %v1603_v47 = vld [vmem:[%s2681_s0 + $0x128] sm:$0xf0]  ;;  %v1602_v49 = vor.u32 %v1812_v43, %v1601_v42  ;;  %v1478_v50 = vor.u32 %v1779_v44, %v1475_v45  ;;  %v1481_v52 = vld [vmem:[%s2681_s0 + $0x30] sm:$0xf]  ;;  %v1782_v53 = vld [vmem:[%s2681_s0 + $0x34] sm:$0xf0] }
   0xf   :  { %830 = vmatpush.bf16.msra.mxu1 %v1851_v7  ;;  %2057 = vmatpush.bf16.msra.mxu3 %v1851_v7  ;;  %v1606_v51 = vor.u32 %v1811_v46, %v1603_v47  ;;  %v1609_v54 = vld [vmem:[%s2681_s0 + $0x130] sm:$0xf]  ;;  %v1814_v55 = vld [vmem:[%s2681_s0 + $0x134] sm:$0xf0]  ;;  %v1781_v56 = vld [vmem:[%s2681_s0 + $0x34] sm:$0xf]  ;;  %v1482_v60 = vor.u32 %v1782_v53, %v1481_v52 }
  0x10   :  { %v1483_v57 = vld [vmem:[%s2681_s0 + $0x38] sm:$0xf0]  ;;  %v1813_v58 = vld [vmem:[%s2681_s0 + $0x134] sm:$0xf]  ;;  %v1610_v61 = vor.u32 %v1814_v55, %v1609_v54  ;;  %v1489_v0 = vld [vmem:[%s2681_s0 + $0x40] sm:$0xf] }
  0x11   :  { %v1611_v59 = vld [vmem:[%s2681_s0 + $0x138] sm:$0xf0]  ;;  %v1486_v62 = vor.u32 %v1781_v56, %v1483_v57  ;;  %v1784_v1 = vld [vmem:[%s2681_s0 + $0x44] sm:$0xf0]  ;;  %v1617_v2 = vld [vmem:[%s2681_s0 + $0x140] sm:$0xf] }
  0x12   :  { %662 = vmatpush.bf16.msra.mxu0 %v1842_v8  ;;  %2050 = vmatpush.bf16.msra.mxu2 %v1842_v8  ;;  %v1614_v63 = vor.u32 %v1813_v58, %v1611_v59  ;;  %v1816_v3 = vld [vmem:[%s2681_s0 + $0x144] sm:$0xf0]  ;;  %v1783_v4 = vld [vmem:[%s2681_s0 + $0x44] sm:$0xf]  ;;  %v1491_v5 = vld [vmem:[%s2681_s0 + $0x48] sm:$0xf0]  ;;  %v1490_v8 = vor.u32 %v1784_v1, %v1489_v0 }
  0x13   :  { %831 = vmatpush.bf16.msra.mxu1 %v1850_v9  ;;  %2058 = vmatpush.bf16.msra.mxu3 %v1850_v9  ;;  %v1815_v6 = vld [vmem:[%s2681_s0 + $0x144] sm:$0xf]  ;;  %v1619_v7 = vld [vmem:[%s2681_s0 + $0x148] sm:$0xf0]  ;;  %v1618_v9 = vor.u32 %v1816_v3, %v1617_v2  ;;  %v1785_v16 = vld [vmem:[%s2681_s0 + $0x54] sm:$0xf] }
  0x14   :  { %v1499_v17 = vld [vmem:[%s2681_s0 + $0x58] sm:$0xf0]  ;;  %v1817_v18 = vld [vmem:[%s2681_s0 + $0x154] sm:$0xf]  ;;  %v1787_v28 = vld [vmem:[%s2681_s0 + $0x64] sm:$0xf] }
  0x15   :  { %v1627_v19 = vld [vmem:[%s2681_s0 + $0x158] sm:$0xf0]  ;;  %v1502_v22 = vor.u32 %v1785_v16, %v1499_v17  ;;  %v1507_v29 = vld [vmem:[%s2681_s0 + $0x68] sm:$0xf0]  ;;  %v1819_v30 = vld [vmem:[%s2681_s0 + $0x164] sm:$0xf] }
  0x16   :  { %663 = vmatpush.bf16.msra.mxu0 %v1841_v10  ;;  %2051 = vmatpush.bf16.msra.mxu2 %v1841_v10  ;;  %v1494_v10 = vor.u32 %v1783_v4, %v1491_v5  ;;  %v1630_v23 = vor.u32 %v1817_v18, %v1627_v19  ;;  %v1635_v31 = vld [vmem:[%s2681_s0 + $0x168] sm:$0xf0]  ;;  %v1510_v34 = vor.u32 %v1787_v28, %v1507_v29  ;;  %v1789_v40 = vld [vmem:[%s2681_s0 + $0x74] sm:$0xf]  ;;  %v1515_v41 = vld [vmem:[%s2681_s0 + $0x78] sm:$0xf0] }
  0x17   :  { %832 = vmatpush.bf16.msra.mxu1 %v1849_v11  ;;  %2059 = vmatpush.bf16.msra.mxu3 %v1849_v11  ;;  %v1622_v11 = vor.u32 %v1815_v6, %v1619_v7  ;;  %v1638_v35 = vor.u32 %v1819_v30, %v1635_v31  ;;  %v1821_v42 = vld [vmem:[%s2681_s0 + $0x174] sm:$0xf]  ;;  %v1643_v43 = vld [vmem:[%s2681_s0 + $0x178] sm:$0xf0]  ;;  %v1518_v46 = vor.u32 %v1789_v40, %v1515_v41  ;;  %v1791_v52 = vld [vmem:[%s2681_s0 + $0x84] sm:$0xf] }
  0x18   :  { %v1646_v47 = vor.u32 %v1821_v42, %v1643_v43  ;;  %v1523_v53 = vld [vmem:[%s2681_s0 + $0x88] sm:$0xf0]  ;;  %v1823_v54 = vld [vmem:[%s2681_s0 + $0x184] sm:$0xf]  ;;  %v1529_v6 = vld [vmem:[%s2681_s0 + $0x90] sm:$0xf] }
  0x19   :  { %v1651_v55 = vld [vmem:[%s2681_s0 + $0x188] sm:$0xf0]  ;;  %v1526_v59 = vor.u32 %v1791_v52, %v1523_v53  ;;  %v1794_v7 = vld [vmem:[%s2681_s0 + $0x94] sm:$0xf0]  ;;  %v1537_v40 = vld [vmem:[%s2681_s0 + $0xa0] sm:$0xf] }
  0x1a   :  { %664 = vmatpush.bf16.msra.mxu0 %v1840_v12  ;;  %2052 = vmatpush.bf16.msra.mxu2 %v1840_v12  ;;  %v1497_v12 = vld [vmem:[%s2681_s0 + $0x50] sm:$0xf]  ;;  %v1796_v41 = vld [vmem:[%s2681_s0 + $0xa4] sm:$0xf0]  ;;  %v1665_v42 = vld [vmem:[%s2681_s0 + $0x1a0] sm:$0xf] }
  0x1b   :  { %833 = vmatpush.bf16.msra.mxu1 %v1848_v13  ;;  %2060 = vmatpush.bf16.msra.mxu3 %v1848_v13  ;;  %v1786_v13 = vld [vmem:[%s2681_s0 + $0x54] sm:$0xf0] }
  0x1c   :  { %v1498_v20 = vor.u32 %v1786_v13, %v1497_v12  ;;  %v1793_v12 = vld [vmem:[%s2681_s0 + $0x94] sm:$0xf]  ;;  %v1531_v13 = vld [vmem:[%s2681_s0 + $0x98] sm:$0xf0] }
  0x1e   :  { %665 = vmatpush.bf16.msra.mxu0 %v1839_v14  ;;  %2053 = vmatpush.bf16.msra.mxu2 %v1839_v14  ;;  %v1625_v14 = vld [vmem:[%s2681_s0 + $0x150] sm:$0xf] }
  0x1f   :  { %834 = vmatpush.bf16.msra.mxu1 %v1847_v15  ;;  %2061 = vmatpush.bf16.msra.mxu3 %v1847_v15  ;;  %v1818_v15 = vld [vmem:[%s2681_s0 + $0x154] sm:$0xf0] }
  0x20   :  { %v1626_v21 = vor.u32 %v1818_v15, %v1625_v14  ;;  %v1825_v14 = vld [vmem:[%s2681_s0 + $0x194] sm:$0xf]  ;;  %v1659_v15 = vld [vmem:[%s2681_s0 + $0x198] sm:$0xf0] }
  0x21   :  { %666 = vmatmul.bf16.vlgmr.msra.gmra.mxu0 %v1458_v24  ;;  %746 = vmatmul.bf16.vlgmr.msra.gmra.mxu2 %v1586_v25  ;;  %v1505_v24 = vld [vmem:[%s2681_s0 + $0x60] sm:$0xf]  ;;  %v1788_v25 = vld [vmem:[%s2681_s0 + $0x64] sm:$0xf0] }
  0x22   :  { %835 = vmatmul.bf16.vlgmr.msra.gmra.mxu1 %v1462_v26  ;;  %915 = vmatmul.bf16.vlgmr.msra.gmra.mxu3 %v1590_v27  ;;  %v1633_v26 = vld [vmem:[%s2681_s0 + $0x160] sm:$0xf]  ;;  %v1820_v27 = vld [vmem:[%s2681_s0 + $0x164] sm:$0xf0]  ;;  %v1506_v32 = vor.u32 %v1788_v25, %v1505_v24 }
  0x23   :  { %v1634_v33 = vor.u32 %v1820_v27, %v1633_v26  ;;  %v1662_v27 = vor.u32 %v1825_v14, %v1659_v15 }
  0x31   :  { %671 = vmatmul.bf16.gmra.mxu0 %v1466_v36  ;;  %751 = vmatmul.bf16.gmra.mxu2 %v1594_v37  ;;  %v1513_v36 = vld [vmem:[%s2681_s0 + $0x70] sm:$0xf]  ;;  %v1790_v37 = vld [vmem:[%s2681_s0 + $0x74] sm:$0xf0] }
  0x32   :  { %840 = vmatmul.bf16.gmra.mxu1 %v1470_v38  ;;  %920 = vmatmul.bf16.gmra.mxu3 %v1598_v39  ;;  %v1641_v38 = vld [vmem:[%s2681_s0 + $0x170] sm:$0xf]  ;;  %v1822_v39 = vld [vmem:[%s2681_s0 + $0x174] sm:$0xf0]  ;;  %v1514_v44 = vor.u32 %v1790_v37, %v1513_v36 }
  0x33   :  { %v1642_v45 = vor.u32 %v1822_v39, %v1641_v38 }
  0x41   :  { %676 = vmatmul.bf16.gmra.mxu0 %v1474_v48  ;;  %756 = vmatmul.bf16.gmra.mxu2 %v1602_v49  ;;  %v1521_v48 = vld [vmem:[%s2681_s0 + $0x80] sm:$0xf]  ;;  %v1792_v49 = vld [vmem:[%s2681_s0 + $0x84] sm:$0xf0] }
  0x42   :  { %845 = vmatmul.bf16.gmra.mxu1 %v1478_v50  ;;  %925 = vmatmul.bf16.gmra.mxu3 %v1606_v51  ;;  %v1649_v50 = vld [vmem:[%s2681_s0 + $0x180] sm:$0xf]  ;;  %v1824_v51 = vld [vmem:[%s2681_s0 + $0x184] sm:$0xf0]  ;;  %v1522_v56 = vor.u32 %v1792_v49, %v1521_v48  ;;  %v1827_v48 = vld [vmem:[%s2681_s0 + $0x1a4] sm:$0xf] }
  0x43   :  { %v1650_v57 = vor.u32 %v1824_v51, %v1649_v50  ;;  %v1667_v49 = vld [vmem:[%s2681_s0 + $0x1a8] sm:$0xf0] }
  0x51   :  { %681 = vmatmul.bf16.gmra.mxu0 %v1482_v60  ;;  %761 = vmatmul.bf16.gmra.mxu2 %v1610_v61  ;;  %v1654_v60 = vor.u32 %v1823_v54, %v1651_v55  ;;  %v1538_v54 = vor.u32 %v1796_v41, %v1537_v40 }
  0x52   :  { %850 = vmatmul.bf16.gmra.mxu1 %v1486_v62  ;;  %930 = vmatmul.bf16.gmra.mxu3 %v1614_v63  ;;  %v2350_v63 = vld [vmem:[%s2682_s2] ss:$0 sm:$0xff] }
  0x61   :  { %686 = vmatmul.bf16.gmra.mxu0 %v1490_v8  ;;  %766 = vmatmul.bf16.gmra.mxu2 %v1618_v9  ;;  %v1657_v8 = vld [vmem:[%s2681_s0 + $0x190] sm:$0xf] }
  0x62   :  { %855 = vmatmul.bf16.gmra.mxu1 %v1494_v10  ;;  %935 = vmatmul.bf16.gmra.mxu3 %v1622_v11  ;;  %v1826_v11 = vld [vmem:[%s2681_s0 + $0x194] sm:$0xf0] }
  0x71   :  { %691 = vmatmul.bf16.gmra.mxu0 %v1498_v20  ;;  %771 = vmatmul.bf16.gmra.mxu2 %v1626_v21  ;;  %v1530_v20 = vor.u32 %v1794_v7, %v1529_v6  ;;  %v1658_v21 = vor.u32 %v1826_v11, %v1657_v8  ;;  %v1545_v11 = vld [vmem:[%s2681_s0 + $0xb0] sm:$0xf] }
  0x72   :  { %860 = vmatmul.bf16.gmra.mxu1 %v1502_v22  ;;  %940 = vmatmul.bf16.gmra.mxu3 %v1630_v23  ;;  %v1534_v22 = vor.u32 %v1793_v12, %v1531_v13  ;;  %v1798_v12 = vld [vmem:[%s2681_s0 + $0xb4] sm:$0xf0]  ;;  %v1673_v13 = vld [vmem:[%s2681_s0 + $0x1b0] sm:$0xf] }
  0x81   :  { %696 = vmatmul.bf16.gmra.mxu0 %v1506_v32  ;;  %776 = vmatmul.bf16.gmra.mxu2 %v1634_v33 }
  0x82   :  { %865 = vmatmul.bf16.gmra.mxu1 %v1510_v34  ;;  %945 = vmatmul.bf16.gmra.mxu3 %v1638_v35 }
  0x91   :  { %701 = vmatmul.bf16.gmra.mxu0 %v1514_v44  ;;  %781 = vmatmul.bf16.gmra.mxu2 %v1642_v45  ;;  %v1828_v45 = vld [vmem:[%s2681_s0 + $0x1a4] sm:$0xf0] }
  0x92   :  { %870 = vmatmul.bf16.gmra.mxu1 %v1518_v46  ;;  %950 = vmatmul.bf16.gmra.mxu3 %v1646_v47  ;;  %v1795_v46 = vld [vmem:[%s2681_s0 + $0xa4] sm:$0xf]  ;;  %v1539_v47 = vld [vmem:[%s2681_s0 + $0xa8] sm:$0xf0]  ;;  %v1666_v55 = vor.u32 %v1828_v45, %v1665_v42  ;;  %v1553_v45 = vld [vmem:[%s2681_s0 + $0xc0] sm:$0xf] }
  0x9e   :  { %v667_v58 = vpop.f32.mrf.mxu0 }
  0x9f   :  { %v836_v61 = vpop.f32.mrf.mxu1 }
  0xa0   :  { %v837_v62 = vadd.f32 %v836_v61, %v667_v58  ;;  %v1670_v61 = vor.u32 %v1827_v48, %v1667_v49 }
  0xa1   :  { %706 = vmatmul.bf16.gmra.mxu0 %v1522_v56  ;;  %786 = vmatmul.bf16.gmra.mxu2 %v1650_v57  ;;  %v1542_v56 = vor.u32 %v1795_v46, %v1539_v47  ;;  %v1800_v46 = vld [vmem:[%s2681_s0 + $0xc4] sm:$0xf0]  ;;  %v1681_v47 = vld [vmem:[%s2681_s0 + $0x1c0] sm:$0xf] }
  0xa2   :  { %875 = vmatmul.bf16.gmra.mxu1 %v1526_v59  ;;  %955 = vmatmul.bf16.gmra.mxu3 %v1654_v60  ;;  %v1195_v4 = vadd.f32 %v2350_v63, %v837_v62 }
  0xa4   :  { %v747_v0 = vpop.f32.mrf.mxu2  ;;  %v1259_v16 = vmax.f32 %v1195_v4, 0.0 }
  0xa5   :  { %v916_v1 = vpop.f32.mrf.mxu3 }
  0xa6   :  { %v669_v2 = vpop.f32.mrf.mxu0  ;;  %v917_v9 = vadd.f32 %v916_v1, %v747_v0 }
  0xa7   :  { %v838_v3 = vpop.f32.mrf.mxu1 }
  0xa8   :  { %v839_v5 = vadd.f32 %v838_v3, %v669_v2  ;;  %v1227_v23 = vadd.f32 %v2350_v63, %v917_v9 }
  0xaa   :  { %v1196_v10 = vadd.f32 %v2350_v63, %v839_v5  ;;  %v1291_v30 = vmax.f32 %v1227_v23, 0.0 }
  0xac   :  { %v1260_v17 = vmax.f32 %v1196_v10, 0.0  ;;  %v749_v18 = vpop.f32.mrf.mxu2 }
  0xad   :  { %v918_v19 = vpop.f32.mrf.mxu3 }
  0xae   :  { %v1858_v24 = vpack.c.bf16 %v1260_v17, %v1259_v16  ;;  %v919_v25 = vadd.f32 %v918_v19, %v749_v18  ;;  %v672_v26 = vpop.f32.mrf.mxu0  ;;  %v1830_v16 = vld [vmem:[%s2681_s0 + $0x1b4] sm:$0xf0]  ;;  %v1797_v17 = vld [vmem:[%s2681_s0 + $0xb4] sm:$0xf]  ;;  %v1547_v18 = vld [vmem:[%s2681_s0 + $0xb8] sm:$0xf0] }
  0xaf   :  { %v841_v28 = vpop.f32.mrf.mxu1  ;;  %v1829_v19 = vld [vmem:[%s2681_s0 + $0x1b4] sm:$0xf] }
  0xb0   :  { %1859 = vst [vmem:[%s2683_s3] sm:$0xff] %v1858_v24   ;;  %v1228_v29 = vadd.f32 %v2350_v63, %v919_v25  ;;  %v842_v33 = vadd.f32 %v841_v28, %v672_v26  ;;  %v1546_v25 = vor.u32 %v1798_v12, %v1545_v11  ;;  %v1674_v26 = vor.u32 %v1830_v16, %v1673_v13  ;;  %v1561_v16 = vld [vmem:[%s2681_s0 + $0xd0] sm:$0xf] }
  0xb1   :  { %711 = vmatmul.bf16.gmra.mxu0 %v1530_v20  ;;  %791 = vmatmul.bf16.gmra.mxu2 %v1658_v21  ;;  %v1675_v20 = vld [vmem:[%s2681_s0 + $0x1b8] sm:$0xf0] }
  0xb2   :  { %v1292_v31 = vmax.f32 %v1228_v29, 0.0  ;;  %880 = vmatmul.bf16.gmra.mxu1 %v1534_v22  ;;  %960 = vmatmul.bf16.gmra.mxu3 %v1662_v27  ;;  %v1197_v38 = vadd.f32 %v2350_v63, %v842_v33  ;;  %v1550_v27 = vor.u32 %v1797_v17, %v1547_v18  ;;  %v1802_v17 = vld [vmem:[%s2681_s0 + $0xd4] sm:$0xf0]  ;;  %v1689_v18 = vld [vmem:[%s2681_s0 + $0x1d0] sm:$0xf] }
  0xb4   :  { %v1938_v32 = vpack.c.bf16 %v1292_v31, %v1291_v30  ;;  %v752_v34 = vpop.f32.mrf.mxu2  ;;  %v1261_v50 = vmax.f32 %v1197_v38, 0.0 }
  0xb5   :  { %v921_v35 = vpop.f32.mrf.mxu3 }
  0xb6   :  { %2030 = vst [vmem:[%s2683_s3 + $0x80] sm:$0xff] %v1938_v32   ;;  %v674_v36 = vpop.f32.mrf.mxu0  ;;  %v922_v43 = vadd.f32 %v921_v35, %v752_v34  ;;  %v1678_v32 = vor.u32 %v1829_v19, %v1675_v20 }
  0xb7   :  { %v843_v37 = vpop.f32.mrf.mxu1 }
  0xb8   :  { %v844_v39 = vadd.f32 %v843_v37, %v674_v36  ;;  %v1229_v57 = vadd.f32 %v2350_v63, %v922_v43 }
  0xba   :  { %v1198_v44 = vadd.f32 %v2350_v63, %v844_v39  ;;  %v1293_v1 = vmax.f32 %v1229_v57, 0.0 }
  0xbc   :  { %v1262_v51 = vmax.f32 %v1198_v44, 0.0  ;;  %v754_v52 = vpop.f32.mrf.mxu2 }
  0xbd   :  { %v923_v53 = vpop.f32.mrf.mxu3 }
  0xbe   :  { %v1863_v58 = vpack.c.bf16 %v1262_v51, %v1261_v50  ;;  %v924_v59 = vadd.f32 %v923_v53, %v754_v52  ;;  %v677_v60 = vpop.f32.mrf.mxu0  ;;  %v1832_v50 = vld [vmem:[%s2681_s0 + $0x1c4] sm:$0xf0]  ;;  %v1799_v51 = vld [vmem:[%s2681_s0 + $0xc4] sm:$0xf]  ;;  %v1555_v52 = vld [vmem:[%s2681_s0 + $0xc8] sm:$0xf0] }
  0xbf   :  { %v846_v62 = vpop.f32.mrf.mxu1  ;;  %v1831_v53 = vld [vmem:[%s2681_s0 + $0x1c4] sm:$0xf] }
  0xc0   :  { %2015 = vst [vmem:[%s2683_s3 + $0x8] sm:$0xff] %v1863_v58   ;;  %v1230_v0 = vadd.f32 %v2350_v63, %v924_v59  ;;  %v847_v4 = vadd.f32 %v846_v62, %v677_v60  ;;  %v1554_v59 = vor.u32 %v1800_v46, %v1553_v45  ;;  %v1682_v60 = vor.u32 %v1832_v50, %v1681_v47  ;;  %v1569_v50 = vld [vmem:[%s2681_s0 + $0xe0] sm:$0xf] }
  0xc1   :  { %716 = vmatmul.bf16.gmra.mxu0 %v1538_v54  ;;  %796 = vmatmul.bf16.gmra.mxu2 %v1666_v55  ;;  %v1683_v54 = vld [vmem:[%s2681_s0 + $0x1c8] sm:$0xf0] }
  0xc2   :  { %v1294_v2 = vmax.f32 %v1230_v0, 0.0  ;;  %885 = vmatmul.bf16.gmra.mxu1 %v1542_v56  ;;  %965 = vmatmul.bf16.gmra.mxu3 %v1670_v61  ;;  %v1199_v9 = vadd.f32 %v2350_v63, %v847_v4  ;;  %v1558_v61 = vor.u32 %v1799_v51, %v1555_v52  ;;  %v1804_v51 = vld [vmem:[%s2681_s0 + $0xe4] sm:$0xf0]  ;;  %v1697_v52 = vld [vmem:[%s2681_s0 + $0x1e0] sm:$0xf] }
  0xc4   :  { %v1943_v3 = vpack.c.bf16 %v1294_v2, %v1293_v1  ;;  %v757_v5 = vpop.f32.mrf.mxu2  ;;  %v1263_v21 = vmax.f32 %v1199_v9, 0.0 }
  0xc5   :  { %v926_v6 = vpop.f32.mrf.mxu3 }
  0xc6   :  { %2031 = vst [vmem:[%s2683_s3 + $0x88] sm:$0xff] %v1943_v3   ;;  %v679_v7 = vpop.f32.mrf.mxu0  ;;  %v927_v14 = vadd.f32 %v926_v6, %v757_v5  ;;  %v1686_v3 = vor.u32 %v1831_v53, %v1683_v54 }
  0xc7   :  { %v848_v8 = vpop.f32.mrf.mxu1 }
  0xc8   :  { %v849_v10 = vadd.f32 %v848_v8, %v679_v7  ;;  %v1231_v28 = vadd.f32 %v2350_v63, %v927_v14 }
  0xca   :  { %v1200_v15 = vadd.f32 %v2350_v63, %v849_v10  ;;  %v1295_v35 = vmax.f32 %v1231_v28, 0.0 }
  0xcc   :  { %v1264_v22 = vmax.f32 %v1200_v15, 0.0  ;;  %v759_v23 = vpop.f32.mrf.mxu2 }
  0xcd   :  { %v928_v24 = vpop.f32.mrf.mxu3 }
  0xce   :  { %v1868_v29 = vpack.c.bf16 %v1264_v22, %v1263_v21  ;;  %v929_v30 = vadd.f32 %v928_v24, %v759_v23  ;;  %v682_v31 = vpop.f32.mrf.mxu0  ;;  %v1834_v21 = vld [vmem:[%s2681_s0 + $0x1d4] sm:$0xf0]  ;;  %v1801_v22 = vld [vmem:[%s2681_s0 + $0xd4] sm:$0xf]  ;;  %v1563_v23 = vld [vmem:[%s2681_s0 + $0xd8] sm:$0xf0] }
  0xcf   :  { %v851_v33 = vpop.f32.mrf.mxu1  ;;  %v1833_v24 = vld [vmem:[%s2681_s0 + $0x1d4] sm:$0xf] }
  0xd0   :  { %2016 = vst [vmem:[%s2683_s3 + $0x10] sm:$0xff] %v1868_v29   ;;  %v1232_v34 = vadd.f32 %v2350_v63, %v929_v30  ;;  %v852_v38 = vadd.f32 %v851_v33, %v682_v31  ;;  %v1562_v30 = vor.u32 %v1802_v17, %v1561_v16  ;;  %v1690_v31 = vor.u32 %v1834_v21, %v1689_v18  ;;  %v1577_v21 = vld [vmem:[%s2681_s0 + $0xf0] sm:$0xf] }
  0xd1   :  { %721 = vmatmul.bf16.gmra.mxu0 %v1546_v25  ;;  %801 = vmatmul.bf16.gmra.mxu2 %v1674_v26  ;;  %v1691_v25 = vld [vmem:[%s2681_s0 + $0x1d8] sm:$0xf0] }
  0xd2   :  { %v1296_v36 = vmax.f32 %v1232_v34, 0.0  ;;  %890 = vmatmul.bf16.gmra.mxu1 %v1550_v27  ;;  %970 = vmatmul.bf16.gmra.mxu3 %v1678_v32  ;;  %v1201_v43 = vadd.f32 %v2350_v63, %v852_v38  ;;  %v1566_v32 = vor.u32 %v1801_v22, %v1563_v23  ;;  %v1806_v22 = vld [vmem:[%s2681_s0 + $0xf4] sm:$0xf0]  ;;  %v1705_v23 = vld [vmem:[%s2681_s0 + $0x1f0] sm:$0xf] }
  0xd4   :  { %v1948_v37 = vpack.c.bf16 %v1296_v36, %v1295_v35  ;;  %v762_v39 = vpop.f32.mrf.mxu2  ;;  %v1265_v55 = vmax.f32 %v1201_v43, 0.0 }
  0xd5   :  { %v931_v40 = vpop.f32.mrf.mxu3 }
  0xd6   :  { %2032 = vst [vmem:[%s2683_s3 + $0x90] sm:$0xff] %v1948_v37   ;;  %v684_v41 = vpop.f32.mrf.mxu0  ;;  %v932_v48 = vadd.f32 %v931_v40, %v762_v39  ;;  %v1694_v37 = vor.u32 %v1833_v24, %v1691_v25 }
  0xd7   :  { %v853_v42 = vpop.f32.mrf.mxu1 }
  0xd8   :  { %v854_v44 = vadd.f32 %v853_v42, %v684_v41  ;;  %v1233_v62 = vadd.f32 %v2350_v63, %v932_v48 }
  0xda   :  { %v1202_v49 = vadd.f32 %v2350_v63, %v854_v44  ;;  %v1297_v6 = vmax.f32 %v1233_v62, 0.0 }
  0xdc   :  { %v1266_v56 = vmax.f32 %v1202_v49, 0.0  ;;  %v764_v57 = vpop.f32.mrf.mxu2 }
  0xdd   :  { %v933_v58 = vpop.f32.mrf.mxu3 }
  0xde   :  { %v1873_v0 = vpack.c.bf16 %v1266_v56, %v1265_v55  ;;  %v934_v1 = vadd.f32 %v933_v58, %v764_v57  ;;  %v687_v2 = vpop.f32.mrf.mxu0  ;;  %v1836_v55 = vld [vmem:[%s2681_s0 + $0x1e4] sm:$0xf0]  ;;  %v1803_v56 = vld [vmem:[%s2681_s0 + $0xe4] sm:$0xf]  ;;  %v1571_v57 = vld [vmem:[%s2681_s0 + $0xe8] sm:$0xf0] }
  0xdf   :  { %v856_v4 = vpop.f32.mrf.mxu1  ;;  %v1835_v58 = vld [vmem:[%s2681_s0 + $0x1e4] sm:$0xf] }
  0xe0   :  { %2017 = vst [vmem:[%s2683_s3 + $0x18] sm:$0xff] %v1873_v0   ;;  %v1234_v5 = vadd.f32 %v2350_v63, %v934_v1  ;;  %v857_v9 = vadd.f32 %v856_v4, %v687_v2  ;;  %v1570_v1 = vor.u32 %v1804_v51, %v1569_v50  ;;  %v1698_v2 = vor.u32 %v1836_v55, %v1697_v52 }
  0xe1   :  { %726 = vmatmul.bf16.gmra.mxu0 %v1554_v59  ;;  %806 = vmatmul.bf16.gmra.mxu2 %v1682_v60  ;;  %v1699_v59 = vld [vmem:[%s2681_s0 + $0x1e8] sm:$0xf0] }
  0xe2   :  { %v1298_v7 = vmax.f32 %v1234_v5, 0.0  ;;  %895 = vmatmul.bf16.gmra.mxu1 %v1558_v61  ;;  %975 = vmatmul.bf16.gmra.mxu3 %v1686_v3  ;;  %v1203_v14 = vadd.f32 %v2350_v63, %v857_v9  ;;  %v1574_v3 = vor.u32 %v1803_v56, %v1571_v57 }
  0xe4   :  { %v1953_v8 = vpack.c.bf16 %v1298_v7, %v1297_v6  ;;  %v767_v10 = vpop.f32.mrf.mxu2  ;;  %v1267_v26 = vmax.f32 %v1203_v14, 0.0 }
  0xe5   :  { %v936_v11 = vpop.f32.mrf.mxu3 }
  0xe6   :  { %2033 = vst [vmem:[%s2683_s3 + $0x98] sm:$0xff] %v1953_v8   ;;  %v689_v12 = vpop.f32.mrf.mxu0  ;;  %v937_v19 = vadd.f32 %v936_v11, %v767_v10  ;;  %v1702_v8 = vor.u32 %v1835_v58, %v1699_v59 }
  0xe7   :  { %v858_v13 = vpop.f32.mrf.mxu1 }
  0xe8   :  { %v859_v15 = vadd.f32 %v858_v13, %v689_v12  ;;  %v1235_v33 = vadd.f32 %v2350_v63, %v937_v19 }
  0xea   :  { %v1204_v20 = vadd.f32 %v2350_v63, %v859_v15  ;;  %v1299_v40 = vmax.f32 %v1235_v33, 0.0 }
  0xec   :  { %v1268_v27 = vmax.f32 %v1204_v20, 0.0  ;;  %v769_v28 = vpop.f32.mrf.mxu2 }
  0xed   :  { %v938_v29 = vpop.f32.mrf.mxu3 }
  0xee   :  { %v1878_v34 = vpack.c.bf16 %v1268_v27, %v1267_v26  ;;  %v939_v35 = vadd.f32 %v938_v29, %v769_v28  ;;  %v692_v36 = vpop.f32.mrf.mxu0  ;;  %v1838_v26 = vld [vmem:[%s2681_s0 + $0x1f4] sm:$0xf0]  ;;  %v1805_v27 = vld [vmem:[%s2681_s0 + $0xf4] sm:$0xf]  ;;  %v1579_v28 = vld [vmem:[%s2681_s0 + $0xf8] sm:$0xf0] }
  0xef   :  { %v861_v38 = vpop.f32.mrf.mxu1  ;;  %v1837_v29 = vld [vmem:[%s2681_s0 + $0x1f4] sm:$0xf] }
  0xf0   :  { %2018 = vst [vmem:[%s2683_s3 + $0x20] sm:$0xff] %v1878_v34   ;;  %v1236_v39 = vadd.f32 %v2350_v63, %v939_v35  ;;  %v862_v43 = vadd.f32 %v861_v38, %v692_v36  ;;  %v1578_v35 = vor.u32 %v1806_v22, %v1577_v21  ;;  %v1706_v36 = vor.u32 %v1838_v26, %v1705_v23 }
  0xf1   :  { %731 = vmatmul.bf16.gmra.mxu0 %v1562_v30  ;;  %811 = vmatmul.bf16.gmra.mxu2 %v1690_v31  ;;  %v1707_v30 = vld [vmem:[%s2681_s0 + $0x1f8] sm:$0xf0] }
  0xf2   :  { %v1300_v41 = vmax.f32 %v1236_v39, 0.0  ;;  %900 = vmatmul.bf16.gmra.mxu1 %v1566_v32  ;;  %980 = vmatmul.bf16.gmra.mxu3 %v1694_v37  ;;  %v1205_v48 = vadd.f32 %v2350_v63, %v862_v43  ;;  %v1582_v37 = vor.u32 %v1805_v27, %v1579_v28 }
  0xf4   :  { %v1958_v42 = vpack.c.bf16 %v1300_v41, %v1299_v40  ;;  %v772_v44 = vpop.f32.mrf.mxu2  ;;  %v1269_v60 = vmax.f32 %v1205_v48, 0.0 }
  0xf5   :  { %v941_v45 = vpop.f32.mrf.mxu3 }
  0xf6   :  { %2034 = vst [vmem:[%s2683_s3 + $0xa0] sm:$0xff] %v1958_v42   ;;  %v694_v46 = vpop.f32.mrf.mxu0  ;;  %v942_v53 = vadd.f32 %v941_v45, %v772_v44  ;;  %v1710_v42 = vor.u32 %v1837_v29, %v1707_v30 }
  0xf7   :  { %v863_v47 = vpop.f32.mrf.mxu1 }
  0xf8   :  { %v864_v49 = vadd.f32 %v863_v47, %v694_v46  ;;  %v1237_v4 = vadd.f32 %v2350_v63, %v942_v53 }
  0xfa   :  { %v1206_v54 = vadd.f32 %v2350_v63, %v864_v49  ;;  %v1301_v11 = vmax.f32 %v1237_v4, 0.0 }
  0xfc   :  { %v1270_v61 = vmax.f32 %v1206_v54, 0.0  ;;  %v774_v62 = vpop.f32.mrf.mxu2 }
  0xfd   :  { %v943_v0 = vpop.f32.mrf.mxu3 }
  0xfe   :  { %v1883_v5 = vpack.c.bf16 %v1270_v61, %v1269_v60  ;;  %v944_v6 = vadd.f32 %v943_v0, %v774_v62  ;;  %v697_v7 = vpop.f32.mrf.mxu0 }
  0xff   :  { %v866_v9 = vpop.f32.mrf.mxu1 }
 0x100   :  { %2019 = vst [vmem:[%s2683_s3 + $0x28] sm:$0xff] %v1883_v5   ;;  %v1238_v10 = vadd.f32 %v2350_v63, %v944_v6  ;;  %v867_v14 = vadd.f32 %v866_v9, %v697_v7 }
 0x101   :  { %736 = vmatmul.bf16.gmra.mxu0 %v1570_v1  ;;  %816 = vmatmul.bf16.gmra.mxu2 %v1698_v2 }
 0x102   :  { %v1302_v12 = vmax.f32 %v1238_v10, 0.0  ;;  %905 = vmatmul.bf16.gmra.mxu1 %v1574_v3  ;;  %985 = vmatmul.bf16.gmra.mxu3 %v1702_v8  ;;  %v1207_v19 = vadd.f32 %v2350_v63, %v867_v14 }
 0x104   :  { %v1963_v13 = vpack.c.bf16 %v1302_v12, %v1301_v11  ;;  %v777_v15 = vpop.f32.mrf.mxu2  ;;  %v1271_v31 = vmax.f32 %v1207_v19, 0.0 }
 0x105   :  { %v946_v16 = vpop.f32.mrf.mxu3 }
 0x106   :  { %2035 = vst [vmem:[%s2683_s3 + $0xa8] sm:$0xff] %v1963_v13   ;;  %v699_v17 = vpop.f32.mrf.mxu0  ;;  %v947_v24 = vadd.f32 %v946_v16, %v777_v15 }
 0x107   :  { %v868_v18 = vpop.f32.mrf.mxu1 }
 0x108   :  { %v869_v20 = vadd.f32 %v868_v18, %v699_v17  ;;  %v1239_v38 = vadd.f32 %v2350_v63, %v947_v24 }
 0x10a   :  { %v1208_v25 = vadd.f32 %v2350_v63, %v869_v20  ;;  %v1303_v45 = vmax.f32 %v1239_v38, 0.0 }
 0x10c   :  { %v1272_v32 = vmax.f32 %v1208_v25, 0.0  ;;  %v779_v33 = vpop.f32.mrf.mxu2 }
 0x10d   :  { %v948_v34 = vpop.f32.mrf.mxu3 }
 0x10e   :  { %v1888_v39 = vpack.c.bf16 %v1272_v32, %v1271_v31  ;;  %v949_v40 = vadd.f32 %v948_v34, %v779_v33  ;;  %v702_v41 = vpop.f32.mrf.mxu0 }
 0x10f   :  { %v871_v43 = vpop.f32.mrf.mxu1 }
 0x110   :  { %2020 = vst [vmem:[%s2683_s3 + $0x30] sm:$0xff] %v1888_v39   ;;  %v1240_v44 = vadd.f32 %v2350_v63, %v949_v40  ;;  %v872_v48 = vadd.f32 %v871_v43, %v702_v41 }
 0x111   :  { %741 = vmatmul.bf16.gmra.mxu0 %v1578_v35  ;;  %821 = vmatmul.bf16.gmra.mxu2 %v1706_v36 }
 0x112   :  { %v1304_v46 = vmax.f32 %v1240_v44, 0.0  ;;  %910 = vmatmul.bf16.gmra.mxu1 %v1582_v37  ;;  %990 = vmatmul.bf16.gmra.mxu3 %v1710_v42  ;;  %v1209_v53 = vadd.f32 %v2350_v63, %v872_v48 }
 0x114   :  { %v1968_v47 = vpack.c.bf16 %v1304_v46, %v1303_v45  ;;  %v782_v49 = vpop.f32.mrf.mxu2  ;;  %v1273_v57 = vmax.f32 %v1209_v53, 0.0 }
 0x115   :  { %v951_v50 = vpop.f32.mrf.mxu3 }
 0x116   :  { %2036 = vst [vmem:[%s2683_s3 + $0xb0] sm:$0xff] %v1968_v47   ;;  %v704_v51 = vpop.f32.mrf.mxu0  ;;  %v952_v55 = vadd.f32 %v951_v50, %v782_v49 }
 0x117   :  { %v873_v52 = vpop.f32.mrf.mxu1 }
 0x118   :  { %v874_v54 = vadd.f32 %v873_v52, %v704_v51  ;;  %v1241_v61 = vadd.f32 %v2350_v63, %v952_v55 }
 0x11a   :  { %v1210_v56 = vadd.f32 %v2350_v63, %v874_v54  ;;  %v1305_v4 = vmax.f32 %v1241_v61, 0.0 }
 0x11c   :  { %v1274_v58 = vmax.f32 %v1210_v56, 0.0  ;;  %v784_v59 = vpop.f32.mrf.mxu2 }
 0x11d   :  { %v953_v60 = vpop.f32.mrf.mxu3 }
 0x11e   :  { %v1893_v62 = vpack.c.bf16 %v1274_v58, %v1273_v57  ;;  %v954_v0 = vadd.f32 %v953_v60, %v784_v59  ;;  %v707_v1 = vpop.f32.mrf.mxu0 }
 0x11f   :  { %v876_v2 = vpop.f32.mrf.mxu1 }
 0x120   :  { %2021 = vst [vmem:[%s2683_s3 + $0x38] sm:$0xff] %v1893_v62   ;;  %v1242_v3 = vadd.f32 %v2350_v63, %v954_v0  ;;  %v877_v7 = vadd.f32 %v876_v2, %v707_v1 }
 0x122   :  { %v1306_v5 = vmax.f32 %v1242_v3, 0.0  ;;  %v1211_v12 = vadd.f32 %v2350_v63, %v877_v7 }
 0x124   :  { %v1973_v6 = vpack.c.bf16 %v1306_v5, %v1305_v4  ;;  %v787_v8 = vpop.f32.mrf.mxu2  ;;  %v1275_v16 = vmax.f32 %v1211_v12, 0.0 }
 0x125   :  { %v956_v9 = vpop.f32.mrf.mxu3 }
 0x126   :  { %2037 = vst [vmem:[%s2683_s3 + $0xb8] sm:$0xff] %v1973_v6   ;;  %v709_v10 = vpop.f32.mrf.mxu0  ;;  %v957_v14 = vadd.f32 %v956_v9, %v787_v8 }
 0x127   :  { %v878_v11 = vpop.f32.mrf.mxu1 }
 0x128   :  { %v879_v13 = vadd.f32 %v878_v11, %v709_v10  ;;  %v1243_v20 = vadd.f32 %v2350_v63, %v957_v14 }
 0x12a   :  { %v1212_v15 = vadd.f32 %v2350_v63, %v879_v13  ;;  %v1307_v26 = vmax.f32 %v1243_v20, 0.0 }
 0x12c   :  { %v1276_v17 = vmax.f32 %v1212_v15, 0.0  ;;  %v789_v18 = vpop.f32.mrf.mxu2 }
 0x12d   :  { %v958_v19 = vpop.f32.mrf.mxu3 }
 0x12e   :  { %v1898_v21 = vpack.c.bf16 %v1276_v17, %v1275_v16  ;;  %v959_v22 = vadd.f32 %v958_v19, %v789_v18  ;;  %v712_v23 = vpop.f32.mrf.mxu0 }
 0x12f   :  { %v881_v24 = vpop.f32.mrf.mxu1 }
 0x130   :  { %2022 = vst [vmem:[%s2683_s3 + $0x40] sm:$0xff] %v1898_v21   ;;  %v1244_v25 = vadd.f32 %v2350_v63, %v959_v22  ;;  %v882_v29 = vadd.f32 %v881_v24, %v712_v23 }
 0x132   :  { %v1308_v27 = vmax.f32 %v1244_v25, 0.0  ;;  %v1213_v34 = vadd.f32 %v2350_v63, %v882_v29 }
 0x134   :  { %v1978_v28 = vpack.c.bf16 %v1308_v27, %v1307_v26  ;;  %v792_v30 = vpop.f32.mrf.mxu2  ;;  %v1277_v38 = vmax.f32 %v1213_v34, 0.0 }
 0x135   :  { %v961_v31 = vpop.f32.mrf.mxu3 }
 0x136   :  { %2038 = vst [vmem:[%s2683_s3 + $0xc0] sm:$0xff] %v1978_v28   ;;  %v714_v32 = vpop.f32.mrf.mxu0  ;;  %v962_v36 = vadd.f32 %v961_v31, %v792_v30 }
 0x137   :  { %v883_v33 = vpop.f32.mrf.mxu1 }
 0x138   :  { %v884_v35 = vadd.f32 %v883_v33, %v714_v32  ;;  %v1245_v42 = vadd.f32 %v2350_v63, %v962_v36 }
 0x13a   :  { %v1214_v37 = vadd.f32 %v2350_v63, %v884_v35  ;;  %v1309_v48 = vmax.f32 %v1245_v42, 0.0 }
 0x13c   :  { %v1278_v39 = vmax.f32 %v1214_v37, 0.0  ;;  %v794_v40 = vpop.f32.mrf.mxu2 }
 0x13d   :  { %v963_v41 = vpop.f32.mrf.mxu3 }
 0x13e   :  { %v1903_v43 = vpack.c.bf16 %v1278_v39, %v1277_v38  ;;  %v964_v44 = vadd.f32 %v963_v41, %v794_v40  ;;  %v717_v45 = vpop.f32.mrf.mxu0 }
 0x13f   :  { %v886_v46 = vpop.f32.mrf.mxu1 }
 0x140   :  { %2023 = vst [vmem:[%s2683_s3 + $0x48] sm:$0xff] %v1903_v43   ;;  %v1246_v47 = vadd.f32 %v2350_v63, %v964_v44  ;;  %v887_v51 = vadd.f32 %v886_v46, %v717_v45 }
 0x142   :  { %v1310_v49 = vmax.f32 %v1246_v47, 0.0  ;;  %v1215_v56 = vadd.f32 %v2350_v63, %v887_v51 }
 0x144   :  { %v1983_v50 = vpack.c.bf16 %v1310_v49, %v1309_v48  ;;  %v797_v52 = vpop.f32.mrf.mxu2  ;;  %v1279_v60 = vmax.f32 %v1215_v56, 0.0 }
 0x145   :  { %v966_v53 = vpop.f32.mrf.mxu3 }
 0x146   :  { %2039 = vst [vmem:[%s2683_s3 + $0xc8] sm:$0xff] %v1983_v50   ;;  %v719_v54 = vpop.f32.mrf.mxu0  ;;  %v967_v58 = vadd.f32 %v966_v53, %v797_v52 }
 0x147   :  { %v888_v55 = vpop.f32.mrf.mxu1 }
 0x148   :  { %v889_v57 = vadd.f32 %v888_v55, %v719_v54  ;;  %v1247_v1 = vadd.f32 %v2350_v63, %v967_v58 }
 0x14a   :  { %v1216_v59 = vadd.f32 %v2350_v63, %v889_v57  ;;  %v1311_v7 = vmax.f32 %v1247_v1, 0.0 }
 0x14c   :  { %v1280_v61 = vmax.f32 %v1216_v59, 0.0  ;;  %v799_v62 = vpop.f32.mrf.mxu2 }
 0x14d   :  { %v968_v0 = vpop.f32.mrf.mxu3 }
 0x14e   :  { %v1908_v2 = vpack.c.bf16 %v1280_v61, %v1279_v60  ;;  %v969_v3 = vadd.f32 %v968_v0, %v799_v62  ;;  %v722_v4 = vpop.f32.mrf.mxu0 }
 0x14f   :  { %v891_v5 = vpop.f32.mrf.mxu1 }
 0x150   :  { %2024 = vst [vmem:[%s2683_s3 + $0x50] sm:$0xff] %v1908_v2   ;;  %v1248_v6 = vadd.f32 %v2350_v63, %v969_v3  ;;  %v892_v10 = vadd.f32 %v891_v5, %v722_v4 }
 0x152   :  { %v1312_v8 = vmax.f32 %v1248_v6, 0.0  ;;  %v1217_v15 = vadd.f32 %v2350_v63, %v892_v10 }
 0x154   :  { %v1988_v9 = vpack.c.bf16 %v1312_v8, %v1311_v7  ;;  %v802_v11 = vpop.f32.mrf.mxu2  ;;  %v1281_v19 = vmax.f32 %v1217_v15, 0.0 }
 0x155   :  { %v971_v12 = vpop.f32.mrf.mxu3 }
 0x156   :  { %2040 = vst [vmem:[%s2683_s3 + $0xd0] sm:$0xff] %v1988_v9   ;;  %v724_v13 = vpop.f32.mrf.mxu0  ;;  %v972_v17 = vadd.f32 %v971_v12, %v802_v11 }
 0x157   :  { %v893_v14 = vpop.f32.mrf.mxu1 }
 0x158   :  { %v894_v16 = vadd.f32 %v893_v14, %v724_v13  ;;  %v1249_v23 = vadd.f32 %v2350_v63, %v972_v17 }
 0x15a   :  { %v1218_v18 = vadd.f32 %v2350_v63, %v894_v16  ;;  %v1313_v29 = vmax.f32 %v1249_v23, 0.0 }
 0x15c   :  { %v1282_v20 = vmax.f32 %v1218_v18, 0.0  ;;  %v804_v21 = vpop.f32.mrf.mxu2 }
 0x15d   :  { %v973_v22 = vpop.f32.mrf.mxu3 }
 0x15e   :  { %v1913_v24 = vpack.c.bf16 %v1282_v20, %v1281_v19  ;;  %v974_v25 = vadd.f32 %v973_v22, %v804_v21  ;;  %v727_v26 = vpop.f32.mrf.mxu0 }
 0x15f   :  { %v896_v27 = vpop.f32.mrf.mxu1 }
 0x160   :  { %2025 = vst [vmem:[%s2683_s3 + $0x58] sm:$0xff] %v1913_v24   ;;  %v1250_v28 = vadd.f32 %v2350_v63, %v974_v25  ;;  %v897_v32 = vadd.f32 %v896_v27, %v727_v26 }
 0x162   :  { %v1314_v30 = vmax.f32 %v1250_v28, 0.0  ;;  %v1219_v37 = vadd.f32 %v2350_v63, %v897_v32 }
 0x164   :  { %v1993_v31 = vpack.c.bf16 %v1314_v30, %v1313_v29  ;;  %v807_v33 = vpop.f32.mrf.mxu2  ;;  %v1283_v41 = vmax.f32 %v1219_v37, 0.0 }
 0x165   :  { %v976_v34 = vpop.f32.mrf.mxu3 }
 0x166   :  { %2041 = vst [vmem:[%s2683_s3 + $0xd8] sm:$0xff] %v1993_v31   ;;  %v729_v35 = vpop.f32.mrf.mxu0  ;;  %v977_v39 = vadd.f32 %v976_v34, %v807_v33 }
 0x167   :  { %v898_v36 = vpop.f32.mrf.mxu1 }
 0x168   :  { %v899_v38 = vadd.f32 %v898_v36, %v729_v35  ;;  %v1251_v45 = vadd.f32 %v2350_v63, %v977_v39 }
 0x16a   :  { %v1220_v40 = vadd.f32 %v2350_v63, %v899_v38  ;;  %v1315_v51 = vmax.f32 %v1251_v45, 0.0 }
 0x16c   :  { %v1284_v42 = vmax.f32 %v1220_v40, 0.0  ;;  %v809_v43 = vpop.f32.mrf.mxu2 }
 0x16d   :  { %v978_v44 = vpop.f32.mrf.mxu3 }
 0x16e   :  { %v1918_v46 = vpack.c.bf16 %v1284_v42, %v1283_v41  ;;  %v979_v47 = vadd.f32 %v978_v44, %v809_v43  ;;  %v732_v48 = vpop.f32.mrf.mxu0 }
 0x16f   :  { %v901_v49 = vpop.f32.mrf.mxu1 }
 0x170   :  { %2026 = vst [vmem:[%s2683_s3 + $0x60] sm:$0xff] %v1918_v46   ;;  %v1252_v50 = vadd.f32 %v2350_v63, %v979_v47  ;;  %v902_v54 = vadd.f32 %v901_v49, %v732_v48 }
 0x172   :  { %v1316_v52 = vmax.f32 %v1252_v50, 0.0  ;;  %v1221_v59 = vadd.f32 %v2350_v63, %v902_v54 }
 0x174   :  { %v1998_v53 = vpack.c.bf16 %v1316_v52, %v1315_v51  ;;  %v812_v55 = vpop.f32.mrf.mxu2  ;;  %v1285_v0 = vmax.f32 %v1221_v59, 0.0 }
 0x175   :  { %v981_v56 = vpop.f32.mrf.mxu3 }
 0x176   :  { %2042 = vst [vmem:[%s2683_s3 + $0xe0] sm:$0xff] %v1998_v53   ;;  %v734_v57 = vpop.f32.mrf.mxu0  ;;  %v982_v61 = vadd.f32 %v981_v56, %v812_v55 }
 0x177   :  { %v903_v58 = vpop.f32.mrf.mxu1 }
 0x178   :  { %v904_v60 = vadd.f32 %v903_v58, %v734_v57  ;;  %v1253_v4 = vadd.f32 %v2350_v63, %v982_v61 }
 0x17a   :  { %v1222_v62 = vadd.f32 %v2350_v63, %v904_v60  ;;  %v1317_v10 = vmax.f32 %v1253_v4, 0.0 }
 0x17c   :  { %v1286_v1 = vmax.f32 %v1222_v62, 0.0  ;;  %v814_v2 = vpop.f32.mrf.mxu2 }
 0x17d   :  { %v983_v3 = vpop.f32.mrf.mxu3 }
 0x17e   :  { %v1923_v5 = vpack.c.bf16 %v1286_v1, %v1285_v0  ;;  %v984_v6 = vadd.f32 %v983_v3, %v814_v2  ;;  %v737_v7 = vpop.f32.mrf.mxu0 }
 0x17f   :  { %v906_v8 = vpop.f32.mrf.mxu1 }
 0x180   :  { %2027 = vst [vmem:[%s2683_s3 + $0x68] sm:$0xff] %v1923_v5   ;;  %v1254_v9 = vadd.f32 %v2350_v63, %v984_v6  ;;  %v907_v13 = vadd.f32 %v906_v8, %v737_v7 }
 0x182   :  { %v1318_v11 = vmax.f32 %v1254_v9, 0.0  ;;  %v1223_v18 = vadd.f32 %v2350_v63, %v907_v13 }
 0x184   :  { %v2003_v12 = vpack.c.bf16 %v1318_v11, %v1317_v10  ;;  %v817_v14 = vpop.f32.mrf.mxu2  ;;  %v1287_v22 = vmax.f32 %v1223_v18, 0.0 }
 0x185   :  { %v986_v15 = vpop.f32.mrf.mxu3 }
 0x186   :  { %2043 = vst [vmem:[%s2683_s3 + $0xe8] sm:$0xff] %v2003_v12   ;;  %v739_v16 = vpop.f32.mrf.mxu0  ;;  %v987_v20 = vadd.f32 %v986_v15, %v817_v14 }
 0x187   :  { %v908_v17 = vpop.f32.mrf.mxu1 }
 0x188   :  { %v909_v19 = vadd.f32 %v908_v17, %v739_v16  ;;  %v1255_v26 = vadd.f32 %v2350_v63, %v987_v20 }
 0x18a   :  { %v1224_v21 = vadd.f32 %v2350_v63, %v909_v19  ;;  %v1319_v32 = vmax.f32 %v1255_v26, 0.0 }
 0x18c   :  { %v1288_v23 = vmax.f32 %v1224_v21, 0.0  ;;  %v819_v24 = vpop.f32.mrf.mxu2 }
 0x18d   :  { %v988_v25 = vpop.f32.mrf.mxu3 }
 0x18e   :  { %v1928_v27 = vpack.c.bf16 %v1288_v23, %v1287_v22  ;;  %v989_v28 = vadd.f32 %v988_v25, %v819_v24  ;;  %v742_v29 = vpop.f32.mrf.mxu0 }
 0x18f   :  { %v911_v30 = vpop.f32.mrf.mxu1 }
 0x190   :  { %2028 = vst [vmem:[%s2683_s3 + $0x70] sm:$0xff] %v1928_v27   ;;  %v1256_v31 = vadd.f32 %v2350_v63, %v989_v28  ;;  %v912_v35 = vadd.f32 %v911_v30, %v742_v29 }
 0x192   :  { %v1320_v33 = vmax.f32 %v1256_v31, 0.0  ;;  %v1225_v40 = vadd.f32 %v2350_v63, %v912_v35 }
 0x194   :  { %v2008_v34 = vpack.c.bf16 %v1320_v33, %v1319_v32  ;;  %v822_v36 = vpop.f32.mrf.mxu2  ;;  %v1289_v44 = vmax.f32 %v1225_v40, 0.0 }
 0x195   :  { %v991_v37 = vpop.f32.mrf.mxu3 }
 0x196   :  { %2044 = vst [vmem:[%s2683_s3 + $0xf0] sm:$0xff] %v2008_v34   ;;  %v744_v38 = vpop.f32.mrf.mxu0  ;;  %v992_v42 = vadd.f32 %v991_v37, %v822_v36 }
 0x197   :  { %v913_v39 = vpop.f32.mrf.mxu1 }
 0x198   :  { %v914_v41 = vadd.f32 %v913_v39, %v744_v38  ;;  %v1257_v48 = vadd.f32 %v2350_v63, %v992_v42 }
 0x19a   :  { %v1226_v43 = vadd.f32 %v2350_v63, %v914_v41  ;;  %v1321_v52 = vmax.f32 %v1257_v48, 0.0 }
 0x19c   :  { %v1290_v45 = vmax.f32 %v1226_v43, 0.0  ;;  %v824_v46 = vpop.f32.mrf.mxu2 }
 0x19d   :  { %v993_v47 = vpop.f32.mrf.mxu3 }
 0x19e   :  { %v1933_v49 = vpack.c.bf16 %v1290_v45, %v1289_v44  ;;  %v994_v50 = vadd.f32 %v993_v47, %v824_v46 }
 0x1a0   :  { %2029 = vst [vmem:[%s2683_s3 + $0x78] sm:$0xff] %v1933_v49   ;;  %v1258_v51 = vadd.f32 %v2350_v63, %v994_v50 }
 0x1a2   :  { %v1322_v53 = vmax.f32 %v1258_v51, 0.0 }
 0x1a4   :  { %v2013_v54 = vpack.c.bf16 %v1322_v53, %v1321_v52 }
 0x1a6   :  { %2045 = vst [vmem:[%s2683_s3 + $0xf8] sm:$0xff] %v2013_v54  }

</bundles_post_ra>
